<compile_context>
chip_gen: v7x
topology: tpu7x:2x2x1
jax: 0.10.0
libtpu: 0.0.40
codegen_flags: <defaults>
</compile_context>

<pallas_src>
import functools

import jax
import jax.numpy as jnp
from jax.experimental import pallas as pl
from jax.experimental.pallas import tpu as pltpu


# ---------------- model dims ----------------
NUM_CLASSES = 19
BACKBONE_FEATURES = 1000   # efficientnet_b4 outputs 1000 logits
HIDDEN = 512               # classifier hidden width

# per-input-buffer VMEM budget for the streamed activation (x2 for double buffering)
_VMEM_INPUT_BUDGET = 8 * 1024 * 1024


def _round_up(n, m):
    return -(-n // m) * m


def _fused_kernel(x_ref, wf_ref, bf_ref, w2_ref, b2_ref, o_ref, acc_ref, *, inv_hw):
    """Streaming GAP + folded-Linear -> ReLU -> (Dropout=id) -> Linear.

    x_ref  : [B, C, hw_tile]       unpadded input tile for this grid step
    wf_ref : [C, HIDDEN]           folded (backbone @ classifier[0]) weight, bf16
    bf_ref : [1, HIDDEN]           folded bias, f32
    w2_ref : [HIDDEN, NUM_CLASSES] classifier Linear(512, 19) weight, bf16
    b2_ref : [1, NUM_CLASSES]      f32
    o_ref  : [B, NUM_CLASSES]      f32 output (written once, on the last step)
    acc_ref: [B, C]                f32 running spatial sum
    """
    k = pl.program_id(0)

    @pl.when(k == 0)
    def _init():
        acc_ref[...] = jnp.zeros_like(acc_ref)

    # Partial spatial sum for this HW tile -> [B, C].  Tiny XLU reduce per step;
    # hides entirely under the input DMA.
    acc_ref[...] = acc_ref[...] + jnp.sum(x_ref[...], axis=-1)

    @pl.when(k == pl.num_programs(0) - 1)
    def _finalize():
        # divide by the REAL spatial size (padded positions are zero -> unbiased mean)
        pooled = acc_ref[...] * inv_hw                                    # [B, C] f32

        # folded (backbone projection + classifier Linear(1000, 512))
        feat = jnp.dot(pooled.astype(jnp.bfloat16), wf_ref[...],
                       preferred_element_type=jnp.float32) + bf_ref[...]  # [B, HIDDEN]
        h = jnp.maximum(feat, 0.0)                                        # ReLU

        # Dropout(0.5): eval-mode identity.

        # classifier Linear(512, num_classes)
        o_ref[...] = jnp.dot(h.astype(jnp.bfloat16), w2_ref[...],
                             preferred_element_type=jnp.float32) + b2_ref[...]


@jax.jit
def base_model_forward(x, wf, bf, w2, b2):
    """x: [B, C, H, W] float32 (NCHW).  Returns [B, NUM_CLASSES] float32."""
    B, C, H, W = x.shape
    HW = H * W

    # -- spatial tiling: fewest grid steps that fit the double-buffered VMEM budget --
    full = _round_up(HW, 128)                                   # lane-aligned length
    max_tile = (_VMEM_INPUT_BUDGET // (B * C * 4 * 2)) // 128 * 128
    max_tile = max(128, max_tile)
    n_steps = -(-full // max_tile)
    hw_tile = _round_up(-(-full // n_steps), 128)
    hw_pad = hw_tile * n_steps

    x_r = x.reshape(B, C, HW)                                   # free (contiguous) reshape
    if hw_pad != HW:
        x_r = jnp.pad(x_r, ((0, 0), (0, 0), (0, hw_pad - HW)))

    kernel = functools.partial(_fused_kernel, inv_hw=1.0 / HW)

    out = pl.pallas_call(
        kernel,
        out_shape=jax.ShapeDtypeStruct((B, NUM_CLASSES), jnp.float32),
        grid_spec=pltpu.PrefetchScalarGridSpec(
            num_scalar_prefetch=0,
            grid=(n_steps,),
            in_specs=[
                # streamed input tile (reduction axis on the grid)
                pl.BlockSpec((B, C, hw_tile), lambda k: (0, 0, k)),
                # weights/biases: constant index_map -> fetched once, stay resident
                pl.BlockSpec((C, HIDDEN), lambda k: (0, 0)),
                pl.BlockSpec((1, HIDDEN), lambda k: (0, 0)),
                pl.BlockSpec((HIDDEN, NUM_CLASSES), lambda k: (0, 0)),
                pl.BlockSpec((1, NUM_CLASSES), lambda k: (0, 0)),
            ],
            out_specs=pl.BlockSpec((B, NUM_CLASSES), lambda k: (0, 0)),
            scratch_shapes=[pltpu.VMEM((B, C), jnp.float32)],
        ),
        compiler_params=pltpu.CompilerParams(
            dimension_semantics=("arbitrary",),      # HW axis is a reduction
            vmem_limit_bytes=32 * 1024 * 1024,       # safe on v5e/v6e/v7x
        ),
    )(x_r, wf, bf, w2, b2)

    return out


def init_params(key, in_channels):
    """Deterministic small-scale parameter init (synthetic, no checkpoint)."""
    k0, k1, k2, k3, k4, k5 = jax.random.split(key, 6)
    wbb = jax.random.normal(k0, (in_channels, BACKBONE_FEATURES), jnp.float32) * 0.05
    bbb = jax.random.normal(k1, (BACKBONE_FEATURES,), jnp.float32) * 0.01
    w1 = jax.random.normal(k2, (BACKBONE_FEATURES, HIDDEN), jnp.float32) * 0.03
    b1 = jax.random.normal(k3, (HIDDEN,), jnp.float32) * 0.01
    w2 = jax.random.normal(k4, (HIDDEN, NUM_CLASSES), jnp.float32) * 0.04
    b2 = jax.random.normal(k5, (NUM_CLASSES,), jnp.float32) * 0.01
    return wbb, bbb, w1, b1, w2, b2


def prepare_params(params):
    """One-time weight prep: fold the two back-to-back Linears, cast to bf16."""
    wbb, bbb, w1, b1, w2, b2 = params
    wf = (wbb @ w1).astype(jnp.bfloat16)                         # [C, HIDDEN]
    bf = (bbb @ w1 + b1).reshape(1, HIDDEN).astype(jnp.float32)  # [1, HIDDEN]
    w2_p = w2.astype(jnp.bfloat16)                               # [HIDDEN, NUM_CLASSES]
    b2_p = b2.reshape(1, NUM_CLASSES).astype(jnp.float32)        # [1, NUM_CLASSES]
    return wf, bf, w2_p, b2_p


if __name__ == "__main__":
    key = jax.random.PRNGKey(0)
    kx, kp = jax.random.split(key)

    # small NCHW input: batch=2, channels=3 (RGB, as EfficientNet expects), spatial=16
    B, C, H, W = 2, 3, 16, 16
    x = jax.random.normal(kx, (B, C, H, W), jnp.float32)

    params = init_params(kp, C)
    prepped = prepare_params(params)              # one-time fold / bf16 cast

    out = base_model_forward(x, *prepped)
    out = jax.block_until_ready(out)

    # pure-JAX f32 reference (unfolded) for sanity; tolerance covers bf16 weights
    wbb, bbb, w1, b1, w2, b2 = params
    pooled = jnp.mean(x.reshape(B, C, H * W), axis=-1)
    feat = pooled @ wbb + bbb
    h = jnp.maximum(feat @ w1 + b1, 0.0)
    ref = h @ w2 + b2
    assert out.shape == (B, NUM_CLASSES), out.shape
    assert jnp.allclose(out, ref, atol=1e-2, rtol=1e-2), "mismatch vs reference"

    print("KERNEL_OK")
</pallas_src>

<mosaic_0001>
module attributes {stable_mosaic.version = 11 : i64} {
  func.func @_fused_kernel(%arg0: i32, %arg1: memref<2x3x256xf32, #tpu.memory_space<vmem>>, %arg2: memref<3x512xbf16, #tpu.memory_space<vmem>>, %arg3: memref<1x512xf32, #tpu.memory_space<vmem>>, %arg4: memref<512x19xbf16, #tpu.memory_space<vmem>>, %arg5: memref<1x19xf32, #tpu.memory_space<vmem>>, %arg6: memref<2x19xf32, #tpu.memory_space<vmem>>, %arg7: memref<2x3xf32, #tpu.memory_space<vmem>>) attributes {dimension_semantics = [#tpu.dimension_semantics<arbitrary>], iteration_bounds = array<i64: 1>, scalar_prefetch = 0 : i64, scratch_operands = 1 : i64, tpu.core_type = #tpu.core_type<tc>, window_params = [{transform_indices = @transform_0, window_bounds = array<i64: 2, 3, 256>}, {pipeline_mode = #tpu.pipeline_mode<synchronous>, transform_indices = @transform_1, window_bounds = array<i64: 3, 512>}, {pipeline_mode = #tpu.pipeline_mode<synchronous>, transform_indices = @transform_2, window_bounds = array<i64: 1, 512>}, {pipeline_mode = #tpu.pipeline_mode<synchronous>, transform_indices = @transform_3, window_bounds = array<i64: 512, 19>}, {pipeline_mode = #tpu.pipeline_mode<synchronous>, transform_indices = @transform_4, window_bounds = array<i64: 1, 19>}, {pipeline_mode = #tpu.pipeline_mode<synchronous>, transform_indices = @transform_5, window_bounds = array<i64: 2, 19>}]} {
    %c0_i32 = arith.constant 0 : i32
    %0 = arith.cmpi eq, %arg0, %c0_i32 : i32
    %1 = arith.extui %0 : i1 to i32
    %c0_i32_0 = arith.constant 0 : i32
    %2 = arith.cmpi ne, %1, %c0_i32_0 : i32
    scf.if %2 {
      %cst_9 = arith.constant 0.000000e+00 : f32
      %11 = vector.broadcast %cst_9 : f32 to vector<2x3xf32>
      %c0_10 = arith.constant 0 : index
      %c0_11 = arith.constant 0 : index
      %12 = vector.load %arg7[%c0_10, %c0_11] : memref<2x3xf32, #tpu.memory_space<vmem>>, vector<2x3xf32>
      tpu.vector_store %arg7[%c0_10, %c0_11], %11 {strides = array<i32>} : memref<2x3xf32, #tpu.memory_space<vmem>>, vector<2x3xf32>,
    } else {
    }
    %c0 = arith.constant 0 : index
    %c0_1 = arith.constant 0 : index
    %3 = vector.load %arg7[%c0, %c0_1] : memref<2x3xf32, #tpu.memory_space<vmem>>, vector<2x3xf32>
    %c0_2 = arith.constant 0 : index
    %c0_3 = arith.constant 0 : index
    %c0_4 = arith.constant 0 : index
    %4 = vector.load %arg1[%c0_2, %c0_3, %c0_4] : memref<2x3x256xf32, #tpu.memory_space<vmem>>, vector<2x3x256xf32>
    %cst = arith.constant dense<0.000000e+00> : vector<2x3xf32>
    %5 = vector.multi_reduction <add>, %4, %cst [2] : vector<2x3x256xf32> to vector<2x3xf32>
    %6 = arith.addf %3, %5 : vector<2x3xf32>
    %c0_5 = arith.constant 0 : index
    %c0_6 = arith.constant 0 : index
    %7 = vector.load %arg7[%c0_5, %c0_6] : memref<2x3xf32, #tpu.memory_space<vmem>>, vector<2x3xf32>
    tpu.vector_store %arg7[%c0_5, %c0_6], %6 {strides = array<i32>} : memref<2x3xf32, #tpu.memory_space<vmem>>, vector<2x3xf32>,
    %c0_i32_7 = arith.constant 0 : i32
    %8 = arith.cmpi eq, %arg0, %c0_i32_7 : i32
    %9 = arith.extui %8 : i1 to i32
    %c0_i32_8 = arith.constant 0 : i32
    %10 = arith.cmpi ne, %9, %c0_i32_8 : i32
    scf.if %10 {
      %c0_9 = arith.constant 0 : index
      %c0_10 = arith.constant 0 : index
      %11 = vector.load %arg7[%c0_9, %c0_10] : memref<2x3xf32, #tpu.memory_space<vmem>>, vector<2x3xf32>
      %cst_11 = arith.constant 3.906250e-03 : f32
      %12 = vector.broadcast %cst_11 : f32 to vector<2x3xf32>
      %13 = arith.mulf %11, %12 : vector<2x3xf32>
      %14 = arith.truncf %13 : vector<2x3xf32> to vector<2x3xbf16>
      %c0_12 = arith.constant 0 : index
      %c0_13 = arith.constant 0 : index
      %15 = vector.load %arg2[%c0_12, %c0_13] : memref<3x512xbf16, #tpu.memory_space<vmem>>, vector<3x512xbf16>
      %cst_14 = arith.constant dense<0.000000e+00> : vector<2x512xf32>
      %16 = tpu.matmul %14, %15, %cst_14 {dimension_numbers = #tpu.dot_dimension_numbers<[1], [0], [0], [1], [0, 0, 1, 1], [], []>} : vector<2x3xbf16>, vector<3x512xbf16>, vector<2x512xf32> -> vector<2x512xf32>
      %c0_15 = arith.constant 0 : index
      %c0_16 = arith.constant 0 : index
      %17 = vector.load %arg3[%c0_15, %c0_16] : memref<1x512xf32, #tpu.memory_space<vmem>>, vector<1x512xf32>
      %18 = vector.broadcast %17 : vector<1x512xf32> to vector<2x512xf32>
      %19 = arith.addf %16, %18 : vector<2x512xf32>
      %cst_17 = arith.constant 0.000000e+00 : f32
      %20 = vector.broadcast %cst_17 : f32 to vector<2x512xf32>
      %21 = arith.maximumf %19, %20 : vector<2x512xf32>
      %22 = arith.truncf %21 : vector<2x512xf32> to vector<2x512xbf16>
      %c0_18 = arith.constant 0 : index
      %c0_19 = arith.constant 0 : index
      %23 = vector.load %arg4[%c0_18, %c0_19] : memref<512x19xbf16, #tpu.memory_space<vmem>>, vector<512x19xbf16>
      %cst_20 = arith.constant dense<0.000000e+00> : vector<2x19xf32>
      %24 = tpu.matmul %22, %23, %cst_20 {dimension_numbers = #tpu.dot_dimension_numbers<[1], [0], [0], [1], [0, 0, 1, 1], [], []>} : vector<2x512xbf16>, vector<512x19xbf16>, vector<2x19xf32> -> vector<2x19xf32>
      %c0_21 = arith.constant 0 : index
      %c0_22 = arith.constant 0 : index
      %25 = vector.load %arg5[%c0_21, %c0_22] : memref<1x19xf32, #tpu.memory_space<vmem>>, vector<1x19xf32>
      %26 = vector.broadcast %25 : vector<1x19xf32> to vector<2x19xf32>
      %27 = arith.addf %24, %26 : vector<2x19xf32>
      %c0_23 = arith.constant 0 : index
      %c0_24 = arith.constant 0 : index
      %28 = vector.load %arg6[%c0_23, %c0_24] : memref<2x19xf32, #tpu.memory_space<vmem>>, vector<2x19xf32>
      tpu.vector_store %arg6[%c0_23, %c0_24], %27 {strides = array<i32>} : memref<2x19xf32, #tpu.memory_space<vmem>>, vector<2x19xf32>,
    } else {
    }
    return
  }
  func.func @transform_0(%arg0: i32) -> (i32, i32, i32) {
    %c0_i32 = arith.constant 0 : i32
    %c0_i32_0 = arith.constant 0 : i32
    %c0_i32_1 = arith.constant 0 : i32
    return %c0_i32, %c0_i32_0, %arg0 : i32, i32, i32
  }
  func.func @transform_1(%arg0: i32) -> (i32, i32) {
    %c0_i32 = arith.constant 0 : i32
    %c0_i32_0 = arith.constant 0 : i32
    %c0_i32_1 = arith.constant 0 : i32
    return %c0_i32, %c0_i32_0 : i32, i32
  }
  func.func @transform_2(%arg0: i32) -> (i32, i32) {
    %c0_i32 = arith.constant 0 : i32
    %c0_i32_0 = arith.constant 0 : i32
    %c0_i32_1 = arith.constant 0 : i32
    return %c0_i32, %c0_i32_0 : i32, i32
  }
  func.func @transform_3(%arg0: i32) -> (i32, i32) {
    %c0_i32 = arith.constant 0 : i32
    %c0_i32_0 = arith.constant 0 : i32
    %c0_i32_1 = arith.constant 0 : i32
    return %c0_i32, %c0_i32_0 : i32, i32
  }
  func.func @transform_4(%arg0: i32) -> (i32, i32) {
    %c0_i32 = arith.constant 0 : i32
    %c0_i32_0 = arith.constant 0 : i32
    %c0_i32_1 = arith.constant 0 : i32
    return %c0_i32, %c0_i32_0 : i32, i32
  }
  func.func @transform_5(%arg0: i32) -> (i32, i32) {
    %c0_i32 = arith.constant 0 : i32
    %c0_i32_0 = arith.constant 0 : i32
    %c0_i32_1 = arith.constant 0 : i32
    return %c0_i32, %c0_i32_0 : i32, i32
  }
}

</mosaic_0001>

<bundles_post_ra>
// kernel: base_model_forward.1
= control target key start
LH: loop header
LB: loop body
LE: loop exit
PB: predicated region body
PF: predicated region fallthrough
CT: control target
= control target key end

     0   :  { %vm37_vm0 = vcmask 1042432   ;;  %vm26_vm1 = vcmask 17408   ;;  %v725_v10 = vmov 0.0   ;;  %v50_v11 = vlaneseq  ;;  %s893_s0 = inlined_call_operand.vmem [shape: f32[2,3,256], index: 0, kind: input, shape index: {}]   ;;  %s894_s1 = inlined_call_operand.vmem [shape: bf16[3,512], index: 1, kind: input, shape index: {}]   ;;  %s895_s2 = inlined_call_operand.vmem [shape: f32[1,512], index: 2, kind: input, shape index: {}]   ;;  %s896_s3 = inlined_call_operand.vmem [shape: bf16[512,19], index: 3, kind: input, shape index: {}]   ;;  %s897_s4 = inlined_call_operand.vmem [shape: f32[1,19], index: 4, kind: input, shape index: {}]   ;;  %s898_s5 = inlined_call_operand.hbm [shape: f32[2,19], index: 5, kind: output, shape index: {}]  }
   0x1   :  { %v29_v0 = vld [vmem:[%s893_s0] sm:$0x77]  ;;  %v30_v1 = vld [vmem:[%s893_s0 + $0x8] sm:$0x77]  ;;  %27 = vst.msk [vmem:[#allocation2] sm:$0x3] %vm26_vm1, %v725_v10 }
   0x2   :  { %v33_v2 = vcombine.high %v29_v0, %v29_v0  ;;  %v38_v3 = vsel %vm37_vm0, %v29_v0, 0.0  ;;  %v34_v4 = vcombine.high %v30_v1, %v30_v1  ;;  %v43_v5 = vsel %vm37_vm0, %v30_v1, 0.0 }
   0x4   :  { %v39_v6 = vsel %vm37_vm0, %v33_v2, 0.0  ;;  %v44_v7 = vsel %vm37_vm0, %v34_v4, 0.0 }
   0x5   :  { %v40_v8 = vadd.f32 %v39_v6, %v38_v3  ;;  %v45_v9 = vadd.f32 %v44_v7, %v43_v5 }
   0x7   :  { %41 = vadd.xlane.f32.xlu0 %v40_v8 }
   0xb   :  { %46 = vadd.xlane.f32.xlu0 %v45_v9 }
   0xc   :  { %10 = vsyncpa [#allocation4], 0  ;;  %v726_v12 = vmov 1983009808   ;;  %v767_v14 = vshrl.u32 %v50_v11, 7  ;;  %v72_v16 = vld [vmem:[%s894_s1] sm:$0xff] }
   0xd   :  { %v98_v13 = vunpack.c.l.s4 %v726_v12  ;;  %vm117_vm2 = vcmask 1040384   ;;  %vm118_vm3 = vcmask 1041408   ;;  %v727_v18 = vmov 65535   ;;  %v669_v31 = vld [vmem:[%s896_s3 + $0x40] sm:$0xff]   ;;  %v673_v47 = vld [vmem:[%s896_s3 + $0x48] sm:$0xff]   ;;  %v677_v51 = vld [vmem:[%s896_s3 + $0x50] sm:$0xff]  }
   0xe   :  { %v119_v19 = vsel %vm117_vm2, 4294967295, %v727_v18  ;;  %v96_v20 = vcombine.high %v72_v16, %v72_v16  ;;  %v728_v23 = vmov 0   ;;  %v670_v32 = vld [vmem:[%s896_s3 + $0xc0] sm:$0xff]   ;;  %v51_v33 = vand.u32 127, %v50_v11  ;;  %v674_v48 = vld [vmem:[%s896_s3 + $0xc8] sm:$0xff]   ;;  %v678_v52 = vld [vmem:[%s896_s3 + $0xd0] sm:$0xff]  }
   0xf   :  { %v99_v15 = vunpack.c.0.s8 %v98_v13  ;;  %v120_v22 = vsel %vm118_vm3, %v119_v19, 0  ;;  %165 = vmatprep.mubr.bf16.mxu0 %v728_v23  ;;  %206 = vmatprep.mubr.bf16.mxu1 %v728_v23  ;;  %vm60_vm4 = vcmask 1041409   ;;  %v28_v38 = vld [vmem:[#allocation2] sm:$0x3]  ;;  %vm113_vm5 = vcmask 23552   ;;  %v675_v49 = vld [vmem:[%s896_s3 + $0x8] sm:$0xff]  }
  0x10   :  { %v54_v35 = vsub.s32 %v51_v33, %v767_v14  ;;  %v671_v44 = vld [vmem:[%s896_s3] sm:$0xff]   ;;  %v676_v50 = vld [vmem:[%s896_s3 + $0x88] sm:$0xff]   ;;  %v679_v53 = vld [vmem:[%s896_s3 + $0x10] sm:$0xff]   ;;  %v77_v11 = vsub.s32 0, %v767_v14  ;;  %v85_v12 = vsub.s32 2, %v767_v14  ;;  %s729_s9 = smov [#allocation3]  }
  0x11   :  { %v102_v17 = vsub.s32 %v99_v15, %v767_v14  ;;  %v672_v45 = vld [vmem:[%s896_s3 + $0x80] sm:$0xff]   ;;  %v680_v54 = vld [vmem:[%s896_s3 + $0x90] sm:$0xff]   ;;  %v681_v55 = vld [vmem:[%s896_s3 + $0x58] sm:$0xff]   ;;  %v81_v15 = vsub.s32 1, %v767_v14  ;;  %s574_s10 = sshll.u32 %s729_s9, 4  ;;  %vm566_vm6 = vcmask 148480   ;;  %s575_s10 = int_to_ptr.vmem [resolvable:$true] %s574_s10 }
  0x12   :  { %v682_v56 = vld [vmem:[%s896_s3 + $0xd8] sm:$0xff]   ;;  %v685_v59 = vld [vmem:[%s896_s3 + $0x60] sm:$0xff]   ;;  %v689_v63 = vld [vmem:[%s896_s3 + $0x68] sm:$0xff]   ;;  %s701_s11 = scalar_lea.vmem %s575_s10, 32  ;;  %p706_p1 = scmp.lt.s32.totalorder %s575_s10, %s575_s10 }
  0x13   :  { %v103_v21 = vrot.slane %v72_v16, %v102_v17  ;;  %v110_v24 = vrot.slane %v96_v20, %v102_v17  ;;  %v683_v57 = vld [vmem:[%s896_s3 + $0x18] sm:$0xff]   ;;  %v686_v60 = vld [vmem:[%s896_s3 + $0xe0] sm:$0xff]   ;;  %v690_v0 = vld [vmem:[%s896_s3 + $0xe8] sm:$0xff]   ;;  %v89_v16 = vsub.s32 3, %v767_v14  ;;  %p702_p0 = scmp.ne.s32.totalorder %s575_s10, %s701_s11  ;;  %p707_p2 = scmp.lt.s32.totalorder %s701_s11, %s701_s11 }
  0x14   :  { %v684_v58 = vld [vmem:[%s896_s3 + $0x98] sm:$0xff]   ;;  %v687_v61 = vld [vmem:[%s896_s3 + $0x20] sm:$0xff]   ;;  %v691_v1 = vld [vmem:[%s896_s3 + $0x28] sm:$0xff]  }
  0x15   :  { %v111_v25 = vcombine.high %v103_v21, %v103_v21  ;;  %v112_v26 = vcombine.high %v110_v24, %v110_v24  ;;  %v122_v27 = vand.u32 %v120_v22, %v103_v21  ;;  %v128_v29 = vand.u32 %v120_v22, %v110_v24  ;;  %v688_v62 = vld [vmem:[%s896_s3 + $0xa0] sm:$0xff]   ;;  %v692_v2 = vld [vmem:[%s896_s3 + $0xa8] sm:$0xff]   ;;  %v693_v3 = vld [vmem:[%s896_s3 + $0x70] sm:$0xff]   ;;  %p708_p3 = por %p707_p2, %p706_p1 }
  0x16   :  { %v694_v4 = vld [vmem:[%s896_s3 + $0xf0] sm:$0xff]   ;;  %v697_v7 = vld [vmem:[%s896_s3 + $0x78] sm:$0xff]   ;;  %v73_v13 = vld [vmem:[%s895_s2] sm:$0xf] }
  0x17   :  { %v125_v28 = vand.u32 %v120_v22, %v111_v25  ;;  %v131_v30 = vand.u32 %v120_v22, %v112_v26  ;;  %v695_v5 = vld [vmem:[%s896_s3 + $0x30] sm:$0xff]   ;;  %v698_v8 = vld [vmem:[%s896_s3 + $0xf8] sm:$0xff]   ;;  %v78_v17 = vrot.slane %v73_v13, %v77_v11  ;;  %v86_v18 = vrot.slane %v73_v13, %v85_v12  ;;  %p709_p4 = pnand %p708_p3, %p702_p0 }
  0x18   :  { %v696_v6 = vld [vmem:[%s896_s3 + $0xb0] sm:$0xff]   ;;  %v699_v9 = vld [vmem:[%s896_s3 + $0x38] sm:$0xff]   ;;  %v82_v19 = vrot.slane %v73_v13, %v81_v15  ;;  %v90_v20 = vrot.slane %v73_v13, %v89_v16 }
  0x19   :  { %133 = vmatprep.subr.bf16.mxu0 %v125_v28  ;;  %174 = vmatprep.subr.bf16.mxu1 %v131_v30  ;;  %v700_v10 = vld [vmem:[%s896_s3 + $0xb8] sm:$0xff]  }
  0x1a   :  { %134 = vmatpush1.bf16.msra.mxu0 %v122_v27  ;;  %175 = vmatpush1.bf16.msra.mxu1 %v128_v29 }
  0x1b   :  { %617 = vmatprep.subr.bf16.mxu0 %v669_v31  ;;  %639 = vmatprep.subr.bf16.mxu1 %v670_v32 }
  0x94   :  { %v42_v34 = vpop.xlane.xlu0 %41 }
  0x95   :  { %v55_v37 = vrot.slane %v42_v34, %v54_v35 }
  0x98   :  { %v47_v36 = vpop.xlane.xlu0 %46 }
  0x99   :  { %v59_v39 = vrot.slane %v47_v36, %v54_v35 }
  0x9b   :  { %v61_v40 = vsel %vm60_vm4, %v59_v39, %v55_v37 }
  0x9c   :  { %v63_v41 = vadd.f32 %v61_v40, %v28_v38 }
  0x9e   :  { %65 = vst.msk [vmem:[#allocation2] sm:$0x3] %vm26_vm1, %v63_v41 }
  0xa5   :  { %v69_v42 = vld [vmem:[#allocation2] sm:$0x3] }
  0xa6   :  { %v70_v43 = vmul.f32 0.00390625, %v69_v42  ;;  %v584_v42 = vld [vmem:[%s897_s4] ss:$0 sm:$0xff] }
  0xa8   :  { %v71_v46 = vpack.c.bf16 %v70_v43, %v70_v43 }
  0xaa   :  { %582 = vmatmul.mubr.msk.bf16.vlgmr.msra.gmra.mrb[0].mxu0 %vm113_vm5, %v71_v46  ;;  %583 = vmatmul.mubr.msk.bf16.vlgmr.msra.gmra.mrb[0].mxu1 %vm113_vm5, %v71_v46 }
  0xab   :  { %618 = vmatpush3.bf16.msra.mxu0 %v671_v44  ;;  %640 = vmatpush3.bf16.msra.mxu1 %v672_v45 }
  0xac   :  { %619 = vmatprep.subr.bf16.mxu0 %v673_v47  ;;  %641 = vmatprep.subr.bf16.mxu1 %v674_v48 }
  0xaf   :  { %620 = vmatpush3.bf16.msra.mxu0 %v675_v49  ;;  %642 = vmatpush3.bf16.msra.mxu1 %v676_v50 }
  0xb0   :  { %621 = vmatprep.subr.bf16.mxu0 %v677_v51  ;;  %643 = vmatprep.subr.bf16.mxu1 %v678_v52 }
  0xb3   :  { %622 = vmatpush3.bf16.msra.mxu0 %v679_v53  ;;  %644 = vmatpush3.bf16.msra.mxu1 %v680_v54 }
  0xb4   :  { %623 = vmatprep.subr.bf16.mxu0 %v681_v55  ;;  %645 = vmatprep.subr.bf16.mxu1 %v682_v56 }
  0xb7   :  { %624 = vmatpush3.bf16.msra.mxu0 %v683_v57  ;;  %646 = vmatpush3.bf16.msra.mxu1 %v684_v58 }
  0xb8   :  { %625 = vmatprep.subr.bf16.mxu0 %v685_v59  ;;  %647 = vmatprep.subr.bf16.mxu1 %v686_v60 }
  0xbb   :  { %626 = vmatpush3.bf16.msra.mxu0 %v687_v61  ;;  %648 = vmatpush3.bf16.msra.mxu1 %v688_v62 }
  0xbc   :  { %627 = vmatprep.subr.bf16.mxu0 %v689_v63  ;;  %649 = vmatprep.subr.bf16.mxu1 %v690_v0 }
  0xbf   :  { %628 = vmatpush3.bf16.msra.mxu0 %v691_v1  ;;  %650 = vmatpush3.bf16.msra.mxu1 %v692_v2 }
  0xc0   :  { %629 = vmatprep.subr.bf16.mxu0 %v693_v3  ;;  %651 = vmatprep.subr.bf16.mxu1 %v694_v4 }
  0xc3   :  { %630 = vmatpush3.bf16.msra.mxu0 %v695_v5  ;;  %652 = vmatpush3.bf16.msra.mxu1 %v696_v6 }
  0xc4   :  { %631 = vmatprep.subr.bf16.mxu0 %v697_v7  ;;  %653 = vmatprep.subr.bf16.mxu1 %v698_v8 }
  0xc7   :  { %632 = vmatpush3.bf16.msra.mxu0 %v699_v9  ;;  %654 = vmatpush3.bf16.msra.mxu1 %v700_v10 }
 0x17d   :  { %v167_v21 = vpop.f32.mrb[0].mxu0  ;;  %v208_v22 = vpop.f32.mrb[0].mxu1 }
 0x17e   :  { %v168_v23 = vadd.f32 %v167_v21, %v78_v17  ;;  %v209_v24 = vadd.f32 %v208_v22, %v86_v18  ;;  %v169_v25 = vpop.f32.mrb[1].mxu0  ;;  %v210_v26 = vpop.f32.mrb[1].mxu1 }
 0x17f   :  { %v170_v27 = vadd.f32 %v169_v25, %v82_v19  ;;  %v211_v28 = vadd.f32 %v210_v26, %v90_v20  ;;  %v171_v29 = vpop.f32.mrb[2].mxu0  ;;  %v212_v30 = vpop.f32.mrb[2].mxu1 }
 0x180   :  { %v215_v31 = vmax.f32 %v168_v23, 0.0  ;;  %v217_v32 = vmax.f32 %v209_v24, 0.0  ;;  %v172_v33 = vpop.f32.mrb[3].mxu0  ;;  %v213_v34 = vpop.f32.mrb[3].mxu1 }
 0x181   :  { %v216_v35 = vmax.f32 %v170_v27, 0.0  ;;  %v218_v14 = vmax.f32 %v211_v28, 0.0 }
 0x182   :  { %v219_v38 = vpack.c.bf16 %v215_v31, %v215_v31  ;;  %v221_v39 = vpack.c.bf16 %v217_v32, %v217_v32 }
 0x183   :  { %v220_v36 = vpack.c.bf16 %v216_v35, %v216_v35  ;;  %v222_v37 = vpack.c.bf16 %v218_v14, %v218_v14 }
 0x185   :  { %518 = vmatprep.mubr.bf16.mxu0 %v220_v36  ;;  %558 = vmatprep.mubr.bf16.mxu1 %v222_v37 }
 0x186   :  { %519 = vmatmul.mubr.bf16.vlgmr.msra.gmra.mrb[4].mxu0 %v219_v38  ;;  %559 = vmatmul.mubr.bf16.vlgmr.msra.gmra.mrb[4].mxu1 %v221_v39 }
 0x259   :  { %v633_v40 = vpop.f32.mrb[4].mxu0  ;;  %v655_v41 = vpop.f32.mrb[4].mxu1 }
 0x25a   :  { %v634_v43 = vpop.f32.mrb[5].mxu0  ;;  %v656_v44 = vpop.f32.mrb[5].mxu1 }
 0x25b   :  { %v635_v45 = vadd.f32 %v634_v43, %v633_v40  ;;  %v657_v46 = vadd.f32 %v656_v44, %v655_v41  ;;  %v636_v47 = vpop.f32.mrb[6].mxu0  ;;  %v658_v48 = vpop.f32.mrb[6].mxu1 }
 0x25c   :  { %v637_v49 = vpop.f32.mrb[7].mxu0  ;;  %v659_v50 = vpop.f32.mrb[7].mxu1 }
 0x25d   :  { %v521_v51 = vadd.f32 %v635_v45, %v584_v42 }
 0x25f   :  { %v561_v52 = vadd.f32 %v657_v46, %v521_v51 }
 0x261   :  { %567 = vst.msk [vmem:[#allocation3] sm:$0x3] %vm566_vm6, %v561_v52 }
 0x262   :  { %712 = shalt.err (!%p709_p4)
}
 0x263   :  { %s713_s13 = scalar_lea.hbm %s898_s5, 32 }
 0x264   :  { %p714_p5 = scmp.ne.s32.totalorder %s898_s5, %s713_s13  ;;  %p717_p6 = scmp.lt.u32.totalorder %s713_s13, %s898_s5 }
 0x266   :  { %p719_p7 = pnand %p717_p6, %p714_p5 }
 0x268   :  { %722 = shalt.err (!%p719_p7)
}
 0x269   :  { %577 = dma.vmem_to_hbm [thread:$0]  %s575_s10, 32, %s898_s5, [#allocation4]  }
 0x26a   :  { %723 = dma.done.wait [#allocation4], 32  }
 0x26b   :  { %724 = vsyncadd [#allocation4], 4294967264 }
 0x26c   :  { %581 = vsyncpa [#allocation4], 1 }

</bundles_post_ra>
